<compile_context>
chip_gen: v6e
topology: v6e:2x2x1
jax: 0.10.0
libtpu: 0.0.40
codegen_flags: <defaults>
</compile_context>

<pallas_src>
import functools
import math

import jax
import jax.numpy as jnp
from jax.experimental import pallas as pl
from jax.experimental.pallas import tpu as pltpu


# --------------------------------------------------------------------------- #
# Kernels
# --------------------------------------------------------------------------- #
def _trace_update_kernel(traces_ref, s_ref, out_ref, *, decay, scale, additive):
    """One trace-update step on a (block_rows, C) tile.

    `decay` / `scale` are baked Python floats, so there is no SMEM operand and
    the scale==1.0 multiply constant-folds. Spikes may be bool/int8/float; they
    are consumed in their native dtype (no wrapper-side conversion pass).
    """
    decayed = traces_ref[...].astype(jnp.float32) * jnp.float32(decay)
    if additive:
        spikes = s_ref[...].astype(jnp.float32)
        if scale == 1.0:
            out = decayed + spikes
        else:
            out = decayed + jnp.float32(scale) * spikes
    else:
        # traces.masked_fill_(s, 1)
        out = jnp.where(s_ref[...] != 0, jnp.float32(1.0), decayed)
    out_ref[...] = out.astype(out_ref.dtype)


def _trace_update_time_kernel(traces_ref, s_ref, out_ref, acc_ref, *,
                              decay, scale, additive):
    """T fused steps: traces live in a VMEM f32 accumulator across grid=(T,)."""
    t = pl.program_id(0)

    @pl.when(t == 0)
    def _():
        acc_ref[...] = traces_ref[...].astype(jnp.float32)

    cur = acc_ref[...] * jnp.float32(decay)
    spk = s_ref[0]
    if additive:
        if scale == 1.0:
            cur = cur + spk.astype(jnp.float32)
        else:
            cur = cur + jnp.float32(scale) * spk.astype(jnp.float32)
    else:
        cur = jnp.where(spk != 0, jnp.float32(1.0), cur)
    acc_ref[...] = cur

    @pl.when(t == pl.num_programs(0) - 1)
    def _():
        out_ref[...] = acc_ref[...].astype(out_ref.dtype)


# --------------------------------------------------------------------------- #
# Tiling helpers
# --------------------------------------------------------------------------- #
def _lane_dense_2d(shape):
    """Pick a lane-dense 2-D view (rows, width) of a row-major tensor."""
    total = 1
    for d in shape:
        total *= int(d)
    last = int(shape[-1]) if len(shape) else 1
    for width in (4096, 2048, 1024, 512, 256, 128):
        if total % width == 0:
            return total // width, width
    # No 128-multiple width divides the element count: keep the original last dim.
    return max(1, total // max(1, last)), last


def _tpu_budget():
    """(target f32-bytes per traces tile, vmem_limit_bytes) by TPU generation."""
    kind = ""
    try:
        kind = jax.devices()[0].device_kind.lower()
    except Exception:
        pass
    if "v7" in kind:
        # v7x: 64 MiB VMEM per TensorCore (scoped default 32 MiB) — modest tiles.
        return 4 << 20, 48 << 20
    # v5e / v6e: 128 MiB physical VMEM — go big, fewer grid steps.
    return 8 << 20, 64 << 20


def _pick_block_rows(rows, row_bytes_f32, target_bytes):
    """Row tile: multiple of 32 (bool/int8 sublane packing, also covers f32/bf16),
    at most ~target_bytes of f32 per traces tile, and yielding >= 2 grid steps
    whenever rows allow (pipelining + both v7x TensorCores)."""
    if rows < 64:
        return rows  # tiny: one full block (block dims equal array dims)
    max_rows = max(32, (target_bytes // max(1, row_bytes_f32)) // 32 * 32)
    block = min(max_rows, rows)
    # Ensure at least two grid steps: cap at floor(rows/2) rounded down to 32.
    half = max(32, (rows // 2) // 32 * 32)
    block = min(block, half)
    return max(32, block // 32 * 32)


# --------------------------------------------------------------------------- #
# Wrappers
# --------------------------------------------------------------------------- #
def neural_population_forward(
    traces: jax.Array,
    s: jax.Array,
    dt: float,
    tau_s: float = 15.0,
    trace_scale: float = 1.0,
    spike_trace: bool = True,
    additive_spike_trace: bool = True,
) -> jax.Array:
    """One simulation step of NeuralPopulation's trace update. Returns new traces.

    The output is aliased to `traces`; donate `traces` at the caller's jit
    boundary to get a true in-place (PyTorch-buffer-like) update.
    """
    if not spike_trace:
        # forward() only touches traces when spike_trace is True.
        return traces

    orig_shape = traces.shape
    out_dtype = traces.dtype

    # Lane-dense 2-D view (free metadata reshape for row-major contiguous data).
    R2, C2 = _lane_dense_2d(orig_shape)
    traces2 = jnp.reshape(traces, (R2, C2))
    s2 = jnp.reshape(s, (R2, C2))  # native dtype (bool = 1 B/elem), no cast pass

    target_bytes, vmem_limit = _tpu_budget()
    block_rows = _pick_block_rows(R2, C2 * 4, target_bytes)
    grid = (pl.cdiv(R2, block_rows),)  # ragged last block is fine (elementwise)

    # compute_decay(): trace_decay = exp(-dt / tau_s), baked as a constant.
    decay = math.exp(-float(dt) / float(tau_s))
    kernel = functools.partial(
        _trace_update_kernel,
        decay=decay,
        scale=float(trace_scale),
        additive=additive_spike_trace,
    )

    out2 = pl.pallas_call(
        kernel,
        out_shape=jax.ShapeDtypeStruct((R2, C2), out_dtype),
        grid=grid,
        in_specs=[
            pl.BlockSpec((block_rows, C2), lambda i: (i, 0)),  # traces tile
            pl.BlockSpec((block_rows, C2), lambda i: (i, 0)),  # spike tile (bool)
        ],
        out_specs=pl.BlockSpec((block_rows, C2), lambda i: (i, 0)),
        input_output_aliases={0: 0},  # in-place traces update (needs donation)
        compiler_params=pltpu.CompilerParams(
            dimension_semantics=("parallel",),
            vmem_limit_bytes=vmem_limit,
        ),
    )(traces2, s2)

    return jnp.reshape(out2, orig_shape)


def neural_population_forward_timesteps(
    traces: jax.Array,
    s_t: jax.Array,
    dt: float,
    tau_s: float = 15.0,
    trace_scale: float = 1.0,
    spike_trace: bool = True,
    additive_spike_trace: bool = True,
) -> jax.Array:
    """Fused T-step trace update for SMALL populations.

    `s_t` has shape (T, *traces.shape). Traces stay resident in a VMEM f32
    accumulator across a grid=(T,) axis; only per-step spike tiles stream in.
    Intended for populations whose traces fit comfortably in VMEM.
    """
    if not spike_trace:
        return traces

    T = int(s_t.shape[0])
    orig_shape = traces.shape
    out_dtype = traces.dtype

    R2, C2 = _lane_dense_2d(orig_shape)
    traces2 = jnp.reshape(traces, (R2, C2))
    s2 = jnp.reshape(s_t, (T, R2, C2))

    decay = math.exp(-float(dt) / float(tau_s))
    kernel = functools.partial(
        _trace_update_time_kernel,
        decay=decay,
        scale=float(trace_scale),
        additive=additive_spike_trace,
    )

    out2 = pl.pallas_call(
        kernel,
        out_shape=jax.ShapeDtypeStruct((R2, C2), out_dtype),
        grid=(T,),
        in_specs=[
            pl.BlockSpec((R2, C2), lambda t: (0, 0)),      # traces: fetched once
            pl.BlockSpec((1, R2, C2), lambda t: (t, 0, 0)),  # per-step spikes
        ],
        out_specs=pl.BlockSpec((R2, C2), lambda t: (0, 0)),  # written on last step
        scratch_shapes=[pltpu.VMEM((R2, C2), jnp.float32)],  # resident accumulator
        compiler_params=pltpu.CompilerParams(
            dimension_semantics=("arbitrary",),
        ),
    )(traces2, s2)

    return jnp.reshape(out2, orig_shape)


# --------------------------------------------------------------------------- #
# Demo / checks
# --------------------------------------------------------------------------- #
if __name__ == "__main__":
    key = jax.random.PRNGKey(0)
    k_tr, k_sp, k_tr2, k_sp2, k_tr3, k_sp3, k_spt = jax.random.split(key, 7)

    dt = 1.0
    tau_s = 15.0
    trace_scale = 1.0
    decay = jnp.float32(math.exp(-dt / tau_s))

    # --- Small population (module-scale demo): shape (16, 128) -------------
    shape = (16, 128)
    traces = jax.random.uniform(k_tr, shape, dtype=jnp.float32)
    s = jax.random.bernoulli(k_sp, p=0.3, shape=shape)  # bool spike tensor

    new_traces = jax.block_until_ready(
        neural_population_forward(
            traces, s, dt, tau_s=tau_s, trace_scale=trace_scale,
            spike_trace=True, additive_spike_trace=True,
        )
    )
    ref = traces * decay + trace_scale * s.astype(jnp.float32)
    assert new_traces.dtype == traces.dtype
    assert jnp.allclose(new_traces, ref, atol=1e-6, rtol=1e-6)

    # Non-additive (masked_fill) path.
    new_traces_na = jax.block_until_ready(
        neural_population_forward(
            traces, s, dt, tau_s=tau_s, trace_scale=trace_scale,
            spike_trace=True, additive_spike_trace=False,
        )
    )
    ref_na = jnp.where(s, jnp.float32(1.0), traces * decay)
    assert jnp.allclose(new_traces_na, ref_na, atol=1e-6, rtol=1e-6)

    # --- Medium population: multi-tile grid, >= 2 steps ---------------------
    shape2 = (2048, 512)
    traces2 = jax.random.uniform(k_tr2, shape2, dtype=jnp.float32)
    s2 = jax.random.bernoulli(k_sp2, p=0.1, shape=shape2)
    new_traces2 = jax.block_until_ready(
        neural_population_forward(
            traces2, s2, dt, tau_s=tau_s, trace_scale=trace_scale,
            spike_trace=True, additive_spike_trace=True,
        )
    )
    ref2 = traces2 * decay + trace_scale * s2.astype(jnp.float32)
    assert jnp.allclose(new_traces2, ref2, atol=1e-6, rtol=1e-6)

    # --- Awkward row count: exercises the ragged (cdiv) last block ----------
    shape3 = (1000, 384)
    traces3 = jax.random.uniform(k_tr3, shape3, dtype=jnp.float32)
    s3 = jax.random.bernoulli(k_sp3, p=0.2, shape=shape3)
    new_traces3 = jax.block_until_ready(
        neural_population_forward(
            traces3, s3, dt, tau_s=tau_s, trace_scale=trace_scale,
            spike_trace=True, additive_spike_trace=True,
        )
    )
    ref3 = traces3 * decay + trace_scale * s3.astype(jnp.float32)
    assert jnp.allclose(new_traces3, ref3, atol=1e-6, rtol=1e-6)

    # --- Time-fused variant: small population, T steps in one pallas_call ---
    T = 8
    s_t = jax.random.bernoulli(k_spt, p=0.3, shape=(T,) + shape)
    fused = jax.block_until_ready(
        neural_population_forward_timesteps(
            traces, s_t, dt, tau_s=tau_s, trace_scale=trace_scale,
            spike_trace=True, additive_spike_trace=True,
        )
    )
    ref_t = traces
    for t in range(T):
        ref_t = ref_t * decay + trace_scale * s_t[t].astype(jnp.float32)
    assert fused.dtype == traces.dtype
    assert jnp.allclose(fused, ref_t, atol=1e-5, rtol=1e-5)

    print("KERNEL_OK")
</pallas_src>

<mosaic_0001>
module attributes {stable_mosaic.version = 11 : i64} {
  func.func @_trace_update_kernel(%arg0: i32, %arg1: memref<1x2048xf32, #tpu.memory_space<vmem>>, %arg2: memref<1x2048xi32, #tpu.memory_space<vmem>>, %arg3: memref<1x2048xf32, #tpu.memory_space<vmem>>) attributes {dimension_semantics = [#tpu.dimension_semantics<parallel>], iteration_bounds = array<i64: 1>, scalar_prefetch = 0 : i64, scratch_operands = 0 : i64, tpu.core_type = #tpu.core_type<tc>, window_params = [{transform_indices = @transform_0, window_bounds = array<i64: 1, 2048>}, {transform_indices = @transform_1, window_bounds = array<i64: 1, 2048>}, {transform_indices = @transform_2, window_bounds = array<i64: 1, 2048>}]} {
    %c0 = arith.constant 0 : index
    %c0_0 = arith.constant 0 : index
    %0 = vector.load %arg1[%c0, %c0_0] : memref<1x2048xf32, #tpu.memory_space<vmem>>, vector<1x2048xf32>
    %cst = arith.constant 0.935506999 : f32
    %1 = vector.broadcast %cst : f32 to vector<1x2048xf32>
    %2 = arith.mulf %0, %1 : vector<1x2048xf32>
    %c0_1 = arith.constant 0 : index
    %c0_2 = arith.constant 0 : index
    %3 = vector.load %arg2[%c0_1, %c0_2] : memref<1x2048xi32, #tpu.memory_space<vmem>>, vector<1x2048xi32>
    %cst_3 = arith.constant dense<0> : vector<1x2048xi32>
    %4 = arith.cmpi ne, %3, %cst_3 : vector<1x2048xi32>
    %5 = arith.extui %4 : vector<1x2048xi1> to vector<1x2048xi32>
    %6 = arith.sitofp %5 : vector<1x2048xi32> to vector<1x2048xf32>
    %7 = arith.addf %2, %6 : vector<1x2048xf32>
    %c0_4 = arith.constant 0 : index
    %c0_5 = arith.constant 0 : index
    %8 = vector.load %arg3[%c0_4, %c0_5] : memref<1x2048xf32, #tpu.memory_space<vmem>>, vector<1x2048xf32>
    tpu.vector_store %arg3[%c0_4, %c0_5], %7 {strides = array<i32>} : memref<1x2048xf32, #tpu.memory_space<vmem>>, vector<1x2048xf32>,
    return
  }
  func.func @transform_0(%arg0: i32) -> (i32, i32) {
    %c0_i32 = arith.constant 0 : i32
    %c0_i32_0 = arith.constant 0 : i32
    return %arg0, %c0_i32 : i32, i32
  }
  func.func @transform_1(%arg0: i32) -> (i32, i32) {
    %c0_i32 = arith.constant 0 : i32
    %c0_i32_0 = arith.constant 0 : i32
    return %arg0, %c0_i32 : i32, i32
  }
  func.func @transform_2(%arg0: i32) -> (i32, i32) {
    %c0_i32 = arith.constant 0 : i32
    %c0_i32_0 = arith.constant 0 : i32
    return %arg0, %c0_i32 : i32, i32
  }
}

</mosaic_0001>

<bundles_post_ra>
// kernel: tpu_custom_call.1
= control target key start
LH: loop header
LB: loop body
LE: loop exit
PB: predicated region body
PF: predicated region fallthrough
CT: control target
= control target key end

     0   :  { %7 = vsyncpa [#allocation3], 0  ;;  %s134_s0 = inlined_call_operand.hbm [shape: f32[1,2048], index: 0, kind: input, shape index: {}, may-alias: {0,2}]   ;;  %s135_s1 = inlined_call_operand.vmem [shape: s32[1,2048], index: 1, kind: input, shape index: {}]   ;;  %s136_s2 = inlined_call_operand.hbm [shape: f32[1,2048], index: 2, kind: output, shape index: {}, may-alias: {0,2}]  }
   0x1   :  { %8 = vsyncpa [#allocation4], 0  ;;  %s104_s9 = smov [#allocation2]  }
   0x2   :  { %s15_s10 = sshll.u32 %s104_s9, 4  ;;  %s16_s10 = int_to_ptr.vmem [resolvable:$true] %s15_s10 }
   0x3   :  { %s68_s11 = scalar_lea.vmem %s16_s10, 256  ;;  %p73_p1 = scmp.lt.s32.totalorder %s16_s10, %s16_s10 }
   0x4   :  { %p69_p0 = scmp.ne.s32.totalorder %s16_s10, %s68_s11  ;;  %p74_p2 = scmp.lt.s32.totalorder %s68_s11, %s68_s11 }
   0x6   :  { %p75_p3 = por %p74_p2, %p73_p1 }
   0x8   :  { %p76_p4 = pnand %p75_p3, %p69_p0 }
   0xa   :  { %79 = shalt.err (!%p76_p4)
}
   0xb   :  { %18 = dma.hbm_to_vmem [thread:$0]  %s134_s0, 256, %s16_s10, [#allocation3]  }
   0xc   :  { %100 = dma.done.wait [#allocation3], 256  }
   0xd   :  { %101 = vsyncadd [#allocation3], 4294967040  ;;  %v24_v0 = vld [vmem:[#allocation2] sm:$0xff]  ;;  %v25_v2 = vld [vmem:[#allocation2 + $0x8] sm:$0xff]  ;;  %s105_s16 = smov [#allocation5]   ;;  %v106_v6 = vmov 0.0  }
   0xe   :  { %v28_v1 = vld [vmem:[%s135_s1] sm:$0xff]  ;;  %s46_s17 = sshll.u32 %s105_s16, 4  ;;  %v26_v3 = vmul.f32 0.935507, %v24_v0  ;;  %v27_v4 = vmul.f32 0.935507, %v25_v2  ;;  %s47_s17 = int_to_ptr.vmem [resolvable:$true] %s46_s17 }
   0xf   :  { %vm30_vm0 = vcmp.ne.s32.totalorder %v28_v1, 0  ;;  %v29_v5 = vld [vmem:[%s135_s1 + $0x8] sm:$0xff]  ;;  %s80_s0 = scalar_lea.vmem %s47_s17, 256  ;;  %p85_p6 = scmp.lt.s32.totalorder %s47_s17, %s47_s17 }
  0x10   :  { %v55_v7 = vsel %vm30_vm0, 1.0, %v106_v6  ;;  %vm31_vm1 = vcmp.ne.s32.totalorder %v29_v5, 0  ;;  %p81_p5 = scmp.ne.s32.totalorder %s47_s17, %s80_s0  ;;  %p86_p7 = scmp.lt.s32.totalorder %s80_s0, %s80_s0 }
  0x11   :  { %v36_v8 = vadd.f32 %v55_v7, %v26_v3  ;;  %v56_v9 = vsel %vm31_vm1, 1.0, %v106_v6 }
  0x12   :  { %v37_v10 = vadd.f32 %v56_v9, %v27_v4  ;;  %p87_p8 = por %p86_p7, %p85_p6 }
  0x13   :  { %38 = vst [vmem:[#allocation5] sm:$0xff] %v36_v8 }
  0x14   :  { %39 = vst [vmem:[#allocation5 + $0x8] sm:$0xff] %v37_v10  ;;  %p88_p9 = pnand %p87_p8, %p81_p5 }
  0x16   :  { %91 = shalt.err (!%p88_p9)
}
  0x17   :  { %49 = dma.vmem_to_hbm [thread:$0]  %s47_s17, 256, %s136_s2, [#allocation4]  }
  0x18   :  { %102 = dma.done.wait [#allocation4], 256  }
  0x19   :  { %103 = vsyncadd [#allocation4], 4294967040 }
  0x1a   :  { %53 = vsyncpa [#allocation3], 1 }
  0x1b   :  { %54 = vsyncpa [#allocation4], 1 }

</bundles_post_ra>
